<compile_context>
chip_gen: v7x
topology: tpu7x:2x2x1
jax: 0.10.0
libtpu: 0.0.40
codegen_flags: <defaults>
</compile_context>

<pallas_src>
import functools

import jax
import jax.numpy as jnp
from jax import lax
from jax.experimental import pallas as pl
from jax.experimental.pallas import tpu as pltpu

_NEG_BIG = -1e30  # plain Python float (NOT a jnp array) -> no captured constant


def _ayce_kernel(x1_ref, p_ref, n_ref, out_ref, *, B, G):
    # Block shapes:
    #   x1_ref : (27, TB, Gp)   row r = 3*j + d  ->  x1[b, g*9+j, d]
    #   p_ref  : (3,  TB, 1)
    #   n_ref  : (3,  TB, 1)
    #   out_ref: (1, 8, 128)    row 0 = l1 partial, row 1 = l2 partial
    _, TB, Gp = x1_ref.shape
    b0 = pl.program_id(0) * TB

    lane = lax.broadcasted_iota(jnp.int32, (TB, Gp), 1)   # group index g
    sub = lax.broadcasted_iota(jnp.int32, (TB, Gp), 0)    # batch-in-tile index
    valid = (lane < G) & ((b0 + sub) < B)                 # mask pad lanes/rows

    # Per-batch-element scalars, lane-broadcast against (TB, Gp) slabs.
    p0 = p_ref[0].astype(jnp.float32)
    p1 = p_ref[1].astype(jnp.float32)
    p2 = p_ref[2].astype(jnp.float32)
    n0 = n_ref[0].astype(jnp.float32)
    n1 = n_ref[1].astype(jnp.float32)
    n2 = n_ref[2].astype(jnp.float32)
    p_sq = p0 * p0 + p1 * p1 + p2 * p2                    # (TB, 1)
    n_sq = n0 * n0 + n1 * n1 + n2 * n2                    # (TB, 1)

    min_dp = None
    sum_dp = None
    sum_dn = None
    # Unrolled over the 9 points of a group; D=3 unrolled as explicit FMAs.
    for j in range(9):
        x0 = x1_ref[3 * j + 0].astype(jnp.float32)        # (TB, Gp)
        x1v = x1_ref[3 * j + 1].astype(jnp.float32)
        x2 = x1_ref[3 * j + 2].astype(jnp.float32)

        x_sq = x0 * x0 + x1v * x1v + x2 * x2
        dpj = x_sq + p_sq - 2.0 * (x0 * p0 + x1v * p1 + x2 * p2)
        dnj = x_sq + n_sq - 2.0 * (x0 * n0 + x1v * n1 + x2 * n2)
        # NaN scrub + clamp(0, inf) fused in one select (NaN > 0 is False).
        dpj = jnp.where(dpj > 0.0, dpj, 0.0)
        dnj = jnp.where(dnj > 0.0, dnj, 0.0)

        min_dp = dpj if min_dp is None else jnp.minimum(min_dp, dpj)
        sum_dp = dpj if sum_dp is None else sum_dp + dpj
        sum_dn = dnj if sum_dn is None else sum_dn + dnj

    mean_dp = sum_dp * (1.0 / 9.0)                        # (TB, Gp)
    mean_dn = sum_dn * (1.0 / 9.0)                        # (TB, Gp)

    # l2 partial: sum over valid (b, g) of per-group min distance.
    l2_partial = jnp.sum(jnp.where(valid, min_dp, 0.0))

    # l1 partial: per batch element, relu(max_g(mean_dp - mean_dn + 1)),
    # summed over the valid batch rows of this tile.
    hinge = jnp.where(valid, mean_dp - mean_dn + 1.0, _NEG_BIG)
    inner = jnp.max(hinge, axis=-1, keepdims=True)        # (TB, 1)
    l1_partial = jnp.sum(jnp.maximum(inner, 0.0))

    out_sub = lax.broadcasted_iota(jnp.int32, out_ref.shape, 1)
    out_ref[...] = jnp.where(out_sub == 0, l1_partial,
                             jnp.where(out_sub == 1, l2_partial, 0.0))


def ayce_loss(x1, p, n, *, tile_b=8):
    """Pallas implementation of AYCE_Loss.forward(x1, p, n)."""
    B, N, D = x1.shape
    assert N % 9 == 0, "x1 points must come in groups of 9 (the .view(B,-1,9))"
    assert D == 3
    G = N // 9
    assert p.shape == (B, 1, D)
    assert n.shape == (B, D)

    Gp = max(128, ((G + 127) // 128) * 128)       # lane-dense, padded G
    num_tiles = pl.cdiv(B, tile_b)
    Bp = num_tiles * tile_b

    # ---- wrapper-side layout plumbing (keep input dtype, cast in-kernel) ----
    # x1 (B, N, D) -> (27, B, G) with row r = 3*j + d, then pad B->Bp, G->Gp.
    x1_p = jnp.transpose(x1.reshape(B, G, 9, D), (2, 3, 0, 1)).reshape(9 * D, B, G)
    x1_p = jnp.pad(x1_p, ((0, 0), (0, Bp - B), (0, Gp - G)))
    # p, n -> (3, Bp, 1) per-coord columns.
    p_p = jnp.pad(jnp.transpose(p.reshape(B, D))[:, :, None],
                  ((0, 0), (0, Bp - B), (0, 0)))
    n_p = jnp.pad(jnp.transpose(n.reshape(B, D))[:, :, None],
                  ((0, 0), (0, Bp - B), (0, 0)))

    kernel = functools.partial(_ayce_kernel, B=B, G=G)
    out = pl.pallas_call(
        kernel,
        out_shape=jax.ShapeDtypeStruct((num_tiles, 8, 128), jnp.float32),
        grid=(num_tiles,),
        in_specs=[
            pl.BlockSpec((9 * D, tile_b, Gp), lambda i: (0, i, 0)),
            pl.BlockSpec((D, tile_b, 1), lambda i: (0, i, 0)),
            pl.BlockSpec((D, tile_b, 1), lambda i: (0, i, 0)),
        ],
        out_specs=pl.BlockSpec((1, 8, 128), lambda i: (i, 0, 0)),
        compiler_params=pltpu.CompilerParams(
            dimension_semantics=("parallel",),
            vmem_limit_bytes=32 << 20,
        ),
    )(x1_p, p_p, n_p)

    # Final reduction / scaling of the per-tile partials (cheap, done in XLA).
    l1 = jnp.sum(out[:, 0, 0]) / B
    l2 = jnp.sum(out[:, 1, 0]) / (B * G) * 0.1
    return l1 + l2


def ayce_loss_ref(x1, p, n):
    """Pure-JAX mirror of the PyTorch forward, for verification."""
    B, N, D = x1.shape

    def pairwise(a, b):  # (B, Na, D), (B, Nb, D) -> (B, Na, Nb)
        an = jnp.sum(a * a, axis=-1)[:, :, None]
        bn = jnp.sum(b * b, axis=-1)[:, None, :]
        d = an + bn - 2.0 * jnp.einsum("bnd,bmd->bnm", a, b)
        d = jnp.where(jnp.isnan(d), 0.0, d)
        return jnp.maximum(d, 0.0)

    dp = pairwise(x1, p).reshape(B, -1, 9)                       # (B, G, 9)
    dn = pairwise(x1, n[:, None, :]).reshape(B, -1, 9).mean(-1)  # (B, G)
    l2 = dp.min(-1).mean() * 0.1
    dpm = dp.mean(-1)                                            # (B, G)
    inner = jnp.max(dpm - dn + 1.0, axis=-1)                     # (B,)
    l1 = jnp.maximum(0.0, inner).mean()
    return l1 + l2


if __name__ == "__main__":
    key = jax.random.PRNGKey(0)
    k1, k2, k3 = jax.random.split(key, 3)

    # N = 9 * G with G == B so the original PyTorch broadcasting is valid.
    B, N, D = 2, 18, 3
    x1 = jax.random.normal(k1, (B, N, D), dtype=jnp.float32)
    p = jax.random.normal(k2, (B, 1, D), dtype=jnp.float32)
    n = jax.random.normal(k3, (B, D), dtype=jnp.float32)

    loss = jax.jit(ayce_loss)(x1, p, n)
    loss = jax.block_until_ready(loss)

    ref = ayce_loss_ref(x1, p, n)
    assert jnp.isfinite(loss), "loss is not finite"
    assert jnp.allclose(loss, ref, rtol=1e-4, atol=1e-4), (loss, ref)
    print("KERNEL_OK")
</pallas_src>

<mosaic_0001>
module attributes {stable_mosaic.version = 11 : i64} {
  func.func @_ayce_kernel(%arg0: i32, %arg1: memref<27x8x128xf32, #tpu.memory_space<vmem>>, %arg2: memref<3x8x1xf32, #tpu.memory_space<vmem>>, %arg3: memref<3x8x1xf32, #tpu.memory_space<vmem>>, %arg4: memref<1x8x128xf32, #tpu.memory_space<vmem>>) attributes {dimension_semantics = [#tpu.dimension_semantics<parallel>], iteration_bounds = array<i64: 1>, scalar_prefetch = 0 : i64, scratch_operands = 0 : i64, tpu.core_type = #tpu.core_type<tc>, window_params = [{transform_indices = @transform_0, window_bounds = array<i64: 27, 8, 128>}, {transform_indices = @transform_1, window_bounds = array<i64: 3, 8, 1>}, {transform_indices = @transform_2, window_bounds = array<i64: 3, 8, 1>}, {transform_indices = @transform_3, window_bounds = array<i64: 1, 8, 128>}]} {
    %c8_i32 = arith.constant 8 : i32
    %0 = arith.muli %arg0, %c8_i32 : i32
    %1 = tpu.iota {dimensions = array<i32: 1>} : vector<8x128xi32>
    %2 = tpu.iota {dimensions = array<i32: 0>} : vector<8x128xi32>
    %c2_i32 = arith.constant 2 : i32
    %3 = vector.broadcast %c2_i32 : i32 to vector<8x128xi32>
    %4 = arith.cmpi slt, %1, %3 : vector<8x128xi32>
    %5 = vector.broadcast %0 : i32 to vector<8x128xi32>
    %6 = arith.addi %5, %2 : vector<8x128xi32>
    %c2_i32_0 = arith.constant 2 : i32
    %7 = vector.broadcast %c2_i32_0 : i32 to vector<8x128xi32>
    %8 = arith.cmpi slt, %6, %7 : vector<8x128xi32>
    %9 = arith.andi %4, %8 : vector<8x128xi1>
    %c0 = arith.constant 0 : index
    %c0_1 = arith.constant 0 : index
    %c0_2 = arith.constant 0 : index
    %10 = vector.load %arg2[%c0, %c0_1, %c0_2] : memref<3x8x1xf32, #tpu.memory_space<vmem>>, vector<1x8x1xf32>
    %11 = vector.shape_cast %10 : vector<1x8x1xf32> to vector<8x1xf32>
    %c1 = arith.constant 1 : index
    %c0_3 = arith.constant 0 : index
    %c0_4 = arith.constant 0 : index
    %12 = vector.load %arg2[%c1, %c0_3, %c0_4] : memref<3x8x1xf32, #tpu.memory_space<vmem>>, vector<1x8x1xf32>
    %13 = vector.shape_cast %12 : vector<1x8x1xf32> to vector<8x1xf32>
    %c2 = arith.constant 2 : index
    %c0_5 = arith.constant 0 : index
    %c0_6 = arith.constant 0 : index
    %14 = vector.load %arg2[%c2, %c0_5, %c0_6] : memref<3x8x1xf32, #tpu.memory_space<vmem>>, vector<1x8x1xf32>
    %15 = vector.shape_cast %14 : vector<1x8x1xf32> to vector<8x1xf32>
    %c0_7 = arith.constant 0 : index
    %c0_8 = arith.constant 0 : index
    %c0_9 = arith.constant 0 : index
    %16 = vector.load %arg3[%c0_7, %c0_8, %c0_9] : memref<3x8x1xf32, #tpu.memory_space<vmem>>, vector<1x8x1xf32>
    %17 = vector.shape_cast %16 : vector<1x8x1xf32> to vector<8x1xf32>
    %c1_10 = arith.constant 1 : index
    %c0_11 = arith.constant 0 : index
    %c0_12 = arith.constant 0 : index
    %18 = vector.load %arg3[%c1_10, %c0_11, %c0_12] : memref<3x8x1xf32, #tpu.memory_space<vmem>>, vector<1x8x1xf32>
    %19 = vector.shape_cast %18 : vector<1x8x1xf32> to vector<8x1xf32>
    %c2_13 = arith.constant 2 : index
    %c0_14 = arith.constant 0 : index
    %c0_15 = arith.constant 0 : index
    %20 = vector.load %arg3[%c2_13, %c0_14, %c0_15] : memref<3x8x1xf32, #tpu.memory_space<vmem>>, vector<1x8x1xf32>
    %21 = vector.shape_cast %20 : vector<1x8x1xf32> to vector<8x1xf32>
    %22 = arith.mulf %11, %11 : vector<8x1xf32>
    %23 = arith.mulf %13, %13 : vector<8x1xf32>
    %24 = arith.addf %22, %23 : vector<8x1xf32>
    %25 = arith.mulf %15, %15 : vector<8x1xf32>
    %26 = arith.addf %24, %25 : vector<8x1xf32>
    %27 = arith.mulf %17, %17 : vector<8x1xf32>
    %28 = arith.mulf %19, %19 : vector<8x1xf32>
    %29 = arith.addf %27, %28 : vector<8x1xf32>
    %30 = arith.mulf %21, %21 : vector<8x1xf32>
    %31 = arith.addf %29, %30 : vector<8x1xf32>
    %c0_16 = arith.constant 0 : index
    %c0_17 = arith.constant 0 : index
    %c0_18 = arith.constant 0 : index
    %32 = vector.load %arg1[%c0_16, %c0_17, %c0_18] : memref<27x8x128xf32, #tpu.memory_space<vmem>>, vector<1x8x128xf32>
    %33 = vector.shape_cast %32 : vector<1x8x128xf32> to vector<8x128xf32>
    %c1_19 = arith.constant 1 : index
    %c0_20 = arith.constant 0 : index
    %c0_21 = arith.constant 0 : index
    %34 = vector.load %arg1[%c1_19, %c0_20, %c0_21] : memref<27x8x128xf32, #tpu.memory_space<vmem>>, vector<1x8x128xf32>
    %35 = vector.shape_cast %34 : vector<1x8x128xf32> to vector<8x128xf32>
    %c2_22 = arith.constant 2 : index
    %c0_23 = arith.constant 0 : index
    %c0_24 = arith.constant 0 : index
    %36 = vector.load %arg1[%c2_22, %c0_23, %c0_24] : memref<27x8x128xf32, #tpu.memory_space<vmem>>, vector<1x8x128xf32>
    %37 = vector.shape_cast %36 : vector<1x8x128xf32> to vector<8x128xf32>
    %38 = arith.mulf %33, %33 : vector<8x128xf32>
    %39 = arith.mulf %35, %35 : vector<8x128xf32>
    %40 = arith.addf %38, %39 : vector<8x128xf32>
    %41 = arith.mulf %37, %37 : vector<8x128xf32>
    %42 = arith.addf %40, %41 : vector<8x128xf32>
    %43 = vector.broadcast %26 : vector<8x1xf32> to vector<8x128xf32>
    %44 = arith.addf %42, %43 : vector<8x128xf32>
    %45 = vector.broadcast %11 : vector<8x1xf32> to vector<8x128xf32>
    %46 = arith.mulf %33, %45 : vector<8x128xf32>
    %47 = vector.broadcast %13 : vector<8x1xf32> to vector<8x128xf32>
    %48 = arith.mulf %35, %47 : vector<8x128xf32>
    %49 = arith.addf %46, %48 : vector<8x128xf32>
    %50 = vector.broadcast %15 : vector<8x1xf32> to vector<8x128xf32>
    %51 = arith.mulf %37, %50 : vector<8x128xf32>
    %52 = arith.addf %49, %51 : vector<8x128xf32>
    %cst = arith.constant 2.000000e+00 : f32
    %53 = vector.broadcast %cst : f32 to vector<8x128xf32>
    %54 = arith.mulf %53, %52 : vector<8x128xf32>
    %55 = arith.subf %44, %54 : vector<8x128xf32>
    %56 = vector.broadcast %31 : vector<8x1xf32> to vector<8x128xf32>
    %57 = arith.addf %42, %56 : vector<8x128xf32>
    %58 = vector.broadcast %17 : vector<8x1xf32> to vector<8x128xf32>
    %59 = arith.mulf %33, %58 : vector<8x128xf32>
    %60 = vector.broadcast %19 : vector<8x1xf32> to vector<8x128xf32>
    %61 = arith.mulf %35, %60 : vector<8x128xf32>
    %62 = arith.addf %59, %61 : vector<8x128xf32>
    %63 = vector.broadcast %21 : vector<8x1xf32> to vector<8x128xf32>
    %64 = arith.mulf %37, %63 : vector<8x128xf32>
    %65 = arith.addf %62, %64 : vector<8x128xf32>
    %cst_25 = arith.constant 2.000000e+00 : f32
    %66 = vector.broadcast %cst_25 : f32 to vector<8x128xf32>
    %67 = arith.mulf %66, %65 : vector<8x128xf32>
    %68 = arith.subf %57, %67 : vector<8x128xf32>
    %cst_26 = arith.constant 0.000000e+00 : f32
    %69 = vector.broadcast %cst_26 : f32 to vector<8x128xf32>
    %70 = arith.cmpf ogt, %55, %69 : vector<8x128xf32>
    %cst_27 = arith.constant 0.000000e+00 : f32
    %71 = vector.broadcast %cst_27 : f32 to vector<8x128xf32>
    %72 = arith.select %70, %55, %71 : vector<8x128xi1>, vector<8x128xf32>
    %cst_28 = arith.constant 0.000000e+00 : f32
    %73 = vector.broadcast %cst_28 : f32 to vector<8x128xf32>
    %74 = arith.cmpf ogt, %68, %73 : vector<8x128xf32>
    %cst_29 = arith.constant 0.000000e+00 : f32
    %75 = vector.broadcast %cst_29 : f32 to vector<8x128xf32>
    %76 = arith.select %74, %68, %75 : vector<8x128xi1>, vector<8x128xf32>
    %c3 = arith.constant 3 : index
    %c0_30 = arith.constant 0 : index
    %c0_31 = arith.constant 0 : index
    %77 = vector.load %arg1[%c3, %c0_30, %c0_31] : memref<27x8x128xf32, #tpu.memory_space<vmem>>, vector<1x8x128xf32>
    %78 = vector.shape_cast %77 : vector<1x8x128xf32> to vector<8x128xf32>
    %c4 = arith.constant 4 : index
    %c0_32 = arith.constant 0 : index
    %c0_33 = arith.constant 0 : index
    %79 = vector.load %arg1[%c4, %c0_32, %c0_33] : memref<27x8x128xf32, #tpu.memory_space<vmem>>, vector<1x8x128xf32>
    %80 = vector.shape_cast %79 : vector<1x8x128xf32> to vector<8x128xf32>
    %c5 = arith.constant 5 : index
    %c0_34 = arith.constant 0 : index
    %c0_35 = arith.constant 0 : index
    %81 = vector.load %arg1[%c5, %c0_34, %c0_35] : memref<27x8x128xf32, #tpu.memory_space<vmem>>, vector<1x8x128xf32>
    %82 = vector.shape_cast %81 : vector<1x8x128xf32> to vector<8x128xf32>
    %83 = arith.mulf %78, %78 : vector<8x128xf32>
    %84 = arith.mulf %80, %80 : vector<8x128xf32>
    %85 = arith.addf %83, %84 : vector<8x128xf32>
    %86 = arith.mulf %82, %82 : vector<8x128xf32>
    %87 = arith.addf %85, %86 : vector<8x128xf32>
    %88 = vector.broadcast %26 : vector<8x1xf32> to vector<8x128xf32>
    %89 = arith.addf %87, %88 : vector<8x128xf32>
    %90 = vector.broadcast %11 : vector<8x1xf32> to vector<8x128xf32>
    %91 = arith.mulf %78, %90 : vector<8x128xf32>
    %92 = vector.broadcast %13 : vector<8x1xf32> to vector<8x128xf32>
    %93 = arith.mulf %80, %92 : vector<8x128xf32>
    %94 = arith.addf %91, %93 : vector<8x128xf32>
    %95 = vector.broadcast %15 : vector<8x1xf32> to vector<8x128xf32>
    %96 = arith.mulf %82, %95 : vector<8x128xf32>
    %97 = arith.addf %94, %96 : vector<8x128xf32>
    %cst_36 = arith.constant 2.000000e+00 : f32
    %98 = vector.broadcast %cst_36 : f32 to vector<8x128xf32>
    %99 = arith.mulf %98, %97 : vector<8x128xf32>
    %100 = arith.subf %89, %99 : vector<8x128xf32>
    %101 = vector.broadcast %31 : vector<8x1xf32> to vector<8x128xf32>
    %102 = arith.addf %87, %101 : vector<8x128xf32>
    %103 = vector.broadcast %17 : vector<8x1xf32> to vector<8x128xf32>
    %104 = arith.mulf %78, %103 : vector<8x128xf32>
    %105 = vector.broadcast %19 : vector<8x1xf32> to vector<8x128xf32>
    %106 = arith.mulf %80, %105 : vector<8x128xf32>
    %107 = arith.addf %104, %106 : vector<8x128xf32>
    %108 = vector.broadcast %21 : vector<8x1xf32> to vector<8x128xf32>
    %109 = arith.mulf %82, %108 : vector<8x128xf32>
    %110 = arith.addf %107, %109 : vector<8x128xf32>
    %cst_37 = arith.constant 2.000000e+00 : f32
    %111 = vector.broadcast %cst_37 : f32 to vector<8x128xf32>
    %112 = arith.mulf %111, %110 : vector<8x128xf32>
    %113 = arith.subf %102, %112 : vector<8x128xf32>
    %cst_38 = arith.constant 0.000000e+00 : f32
    %114 = vector.broadcast %cst_38 : f32 to vector<8x128xf32>
    %115 = arith.cmpf ogt, %100, %114 : vector<8x128xf32>
    %cst_39 = arith.constant 0.000000e+00 : f32
    %116 = vector.broadcast %cst_39 : f32 to vector<8x128xf32>
    %117 = arith.select %115, %100, %116 : vector<8x128xi1>, vector<8x128xf32>
    %cst_40 = arith.constant 0.000000e+00 : f32
    %118 = vector.broadcast %cst_40 : f32 to vector<8x128xf32>
    %119 = arith.cmpf ogt, %113, %118 : vector<8x128xf32>
    %cst_41 = arith.constant 0.000000e+00 : f32
    %120 = vector.broadcast %cst_41 : f32 to vector<8x128xf32>
    %121 = arith.select %119, %113, %120 : vector<8x128xi1>, vector<8x128xf32>
    %122 = arith.minimumf %72, %117 : vector<8x128xf32>
    %123 = arith.addf %72, %117 : vector<8x128xf32>
    %124 = arith.addf %76, %121 : vector<8x128xf32>
    %c6 = arith.constant 6 : index
    %c0_42 = arith.constant 0 : index
    %c0_43 = arith.constant 0 : index
    %125 = vector.load %arg1[%c6, %c0_42, %c0_43] : memref<27x8x128xf32, #tpu.memory_space<vmem>>, vector<1x8x128xf32>
    %126 = vector.shape_cast %125 : vector<1x8x128xf32> to vector<8x128xf32>
    %c7 = arith.constant 7 : index
    %c0_44 = arith.constant 0 : index
    %c0_45 = arith.constant 0 : index
    %127 = vector.load %arg1[%c7, %c0_44, %c0_45] : memref<27x8x128xf32, #tpu.memory_space<vmem>>, vector<1x8x128xf32>
    %128 = vector.shape_cast %127 : vector<1x8x128xf32> to vector<8x128xf32>
    %c8 = arith.constant 8 : index
    %c0_46 = arith.constant 0 : index
    %c0_47 = arith.constant 0 : index
    %129 = vector.load %arg1[%c8, %c0_46, %c0_47] : memref<27x8x128xf32, #tpu.memory_space<vmem>>, vector<1x8x128xf32>
    %130 = vector.shape_cast %129 : vector<1x8x128xf32> to vector<8x128xf32>
    %131 = arith.mulf %126, %126 : vector<8x128xf32>
    %132 = arith.mulf %128, %128 : vector<8x128xf32>
    %133 = arith.addf %131, %132 : vector<8x128xf32>
    %134 = arith.mulf %130, %130 : vector<8x128xf32>
    %135 = arith.addf %133, %134 : vector<8x128xf32>
    %136 = vector.broadcast %26 : vector<8x1xf32> to vector<8x128xf32>
    %137 = arith.addf %135, %136 : vector<8x128xf32>
    %138 = vector.broadcast %11 : vector<8x1xf32> to vector<8x128xf32>
    %139 = arith.mulf %126, %138 : vector<8x128xf32>
    %140 = vector.broadcast %13 : vector<8x1xf32> to vector<8x128xf32>
    %141 = arith.mulf %128, %140 : vector<8x128xf32>
    %142 = arith.addf %139, %141 : vector<8x128xf32>
    %143 = vector.broadcast %15 : vector<8x1xf32> to vector<8x128xf32>
    %144 = arith.mulf %130, %143 : vector<8x128xf32>
    %145 = arith.addf %142, %144 : vector<8x128xf32>
    %cst_48 = arith.constant 2.000000e+00 : f32
    %146 = vector.broadcast %cst_48 : f32 to vector<8x128xf32>
    %147 = arith.mulf %146, %145 : vector<8x128xf32>
    %148 = arith.subf %137, %147 : vector<8x128xf32>
    %149 = vector.broadcast %31 : vector<8x1xf32> to vector<8x128xf32>
    %150 = arith.addf %135, %149 : vector<8x128xf32>
    %151 = vector.broadcast %17 : vector<8x1xf32> to vector<8x128xf32>
    %152 = arith.mulf %126, %151 : vector<8x128xf32>
    %153 = vector.broadcast %19 : vector<8x1xf32> to vector<8x128xf32>
    %154 = arith.mulf %128, %153 : vector<8x128xf32>
    %155 = arith.addf %152, %154 : vector<8x128xf32>
    %156 = vector.broadcast %21 : vector<8x1xf32> to vector<8x128xf32>
    %157 = arith.mulf %130, %156 : vector<8x128xf32>
    %158 = arith.addf %155, %157 : vector<8x128xf32>
    %cst_49 = arith.constant 2.000000e+00 : f32
    %159 = vector.broadcast %cst_49 : f32 to vector<8x128xf32>
    %160 = arith.mulf %159, %158 : vector<8x128xf32>
    %161 = arith.subf %150, %160 : vector<8x128xf32>
    %cst_50 = arith.constant 0.000000e+00 : f32
    %162 = vector.broadcast %cst_50 : f32 to vector<8x128xf32>
    %163 = arith.cmpf ogt, %148, %162 : vector<8x128xf32>
    %cst_51 = arith.constant 0.000000e+00 : f32
    %164 = vector.broadcast %cst_51 : f32 to vector<8x128xf32>
    %165 = arith.select %163, %148, %164 : vector<8x128xi1>, vector<8x128xf32>
    %cst_52 = arith.constant 0.000000e+00 : f32
    %166 = vector.broadcast %cst_52 : f32 to vector<8x128xf32>
    %167 = arith.cmpf ogt, %161, %166 : vector<8x128xf32>
    %cst_53 = arith.constant 0.000000e+00 : f32
    %168 = vector.broadcast %cst_53 : f32 to vector<8x128xf32>
    %169 = arith.select %167, %161, %168 : vector<8x128xi1>, vector<8x128xf32>
    %170 = arith.minimumf %122, %165 : vector<8x128xf32>
    %171 = arith.addf %123, %165 : vector<8x128xf32>
    %172 = arith.addf %124, %169 : vector<8x128xf32>
    %c9 = arith.constant 9 : index
    %c0_54 = arith.constant 0 : index
    %c0_55 = arith.constant 0 : index
    %173 = vector.load %arg1[%c9, %c0_54, %c0_55] : memref<27x8x128xf32, #tpu.memory_space<vmem>>, vector<1x8x128xf32>
    %174 = vector.shape_cast %173 : vector<1x8x128xf32> to vector<8x128xf32>
    %c10 = arith.constant 10 : index
    %c0_56 = arith.constant 0 : index
    %c0_57 = arith.constant 0 : index
    %175 = vector.load %arg1[%c10, %c0_56, %c0_57] : memref<27x8x128xf32, #tpu.memory_space<vmem>>, vector<1x8x128xf32>
    %176 = vector.shape_cast %175 : vector<1x8x128xf32> to vector<8x128xf32>
    %c11 = arith.constant 11 : index
    %c0_58 = arith.constant 0 : index
    %c0_59 = arith.constant 0 : index
    %177 = vector.load %arg1[%c11, %c0_58, %c0_59] : memref<27x8x128xf32, #tpu.memory_space<vmem>>, vector<1x8x128xf32>
    %178 = vector.shape_cast %177 : vector<1x8x128xf32> to vector<8x128xf32>
    %179 = arith.mulf %174, %174 : vector<8x128xf32>
    %180 = arith.mulf %176, %176 : vector<8x128xf32>
    %181 = arith.addf %179, %180 : vector<8x128xf32>
    %182 = arith.mulf %178, %178 : vector<8x128xf32>
    %183 = arith.addf %181, %182 : vector<8x128xf32>
    %184 = vector.broadcast %26 : vector<8x1xf32> to vector<8x128xf32>
    %185 = arith.addf %183, %184 : vector<8x128xf32>
    %186 = vector.broadcast %11 : vector<8x1xf32> to vector<8x128xf32>
    %187 = arith.mulf %174, %186 : vector<8x128xf32>
    %188 = vector.broadcast %13 : vector<8x1xf32> to vector<8x128xf32>
    %189 = arith.mulf %176, %188 : vector<8x128xf32>
    %190 = arith.addf %187, %189 : vector<8x128xf32>
    %191 = vector.broadcast %15 : vector<8x1xf32> to vector<8x128xf32>
    %192 = arith.mulf %178, %191 : vector<8x128xf32>
    %193 = arith.addf %190, %192 : vector<8x128xf32>
    %cst_60 = arith.constant 2.000000e+00 : f32
    %194 = vector.broadcast %cst_60 : f32 to vector<8x128xf32>
    %195 = arith.mulf %194, %193 : vector<8x128xf32>
    %196 = arith.subf %185, %195 : vector<8x128xf32>
    %197 = vector.broadcast %31 : vector<8x1xf32> to vector<8x128xf32>
    %198 = arith.addf %183, %197 : vector<8x128xf32>
    %199 = vector.broadcast %17 : vector<8x1xf32> to vector<8x128xf32>
    %200 = arith.mulf %174, %199 : vector<8x128xf32>
    %201 = vector.broadcast %19 : vector<8x1xf32> to vector<8x128xf32>
    %202 = arith.mulf %176, %201 : vector<8x128xf32>
    %203 = arith.addf %200, %202 : vector<8x128xf32>
    %204 = vector.broadcast %21 : vector<8x1xf32> to vector<8x128xf32>
    %205 = arith.mulf %178, %204 : vector<8x128xf32>
    %206 = arith.addf %203, %205 : vector<8x128xf32>
    %cst_61 = arith.constant 2.000000e+00 : f32
    %207 = vector.broadcast %cst_61 : f32 to vector<8x128xf32>
    %208 = arith.mulf %207, %206 : vector<8x128xf32>
    %209 = arith.subf %198, %208 : vector<8x128xf32>
    %cst_62 = arith.constant 0.000000e+00 : f32
    %210 = vector.broadcast %cst_62 : f32 to vector<8x128xf32>
    %211 = arith.cmpf ogt, %196, %210 : vector<8x128xf32>
    %cst_63 = arith.constant 0.000000e+00 : f32
    %212 = vector.broadcast %cst_63 : f32 to vector<8x128xf32>
    %213 = arith.select %211, %196, %212 : vector<8x128xi1>, vector<8x128xf32>
    %cst_64 = arith.constant 0.000000e+00 : f32
    %214 = vector.broadcast %cst_64 : f32 to vector<8x128xf32>
    %215 = arith.cmpf ogt, %209, %214 : vector<8x128xf32>
    %cst_65 = arith.constant 0.000000e+00 : f32
    %216 = vector.broadcast %cst_65 : f32 to vector<8x128xf32>
    %217 = arith.select %215, %209, %216 : vector<8x128xi1>, vector<8x128xf32>
    %218 = arith.minimumf %170, %213 : vector<8x128xf32>
    %219 = arith.addf %171, %213 : vector<8x128xf32>
    %220 = arith.addf %172, %217 : vector<8x128xf32>
    %c12 = arith.constant 12 : index
    %c0_66 = arith.constant 0 : index
    %c0_67 = arith.constant 0 : index
    %221 = vector.load %arg1[%c12, %c0_66, %c0_67] : memref<27x8x128xf32, #tpu.memory_space<vmem>>, vector<1x8x128xf32>
    %222 = vector.shape_cast %221 : vector<1x8x128xf32> to vector<8x128xf32>
    %c13 = arith.constant 13 : index
    %c0_68 = arith.constant 0 : index
    %c0_69 = arith.constant 0 : index
    %223 = vector.load %arg1[%c13, %c0_68, %c0_69] : memref<27x8x128xf32, #tpu.memory_space<vmem>>, vector<1x8x128xf32>
    %224 = vector.shape_cast %223 : vector<1x8x128xf32> to vector<8x128xf32>
    %c14 = arith.constant 14 : index
    %c0_70 = arith.constant 0 : index
    %c0_71 = arith.constant 0 : index
    %225 = vector.load %arg1[%c14, %c0_70, %c0_71] : memref<27x8x128xf32, #tpu.memory_space<vmem>>, vector<1x8x128xf32>
    %226 = vector.shape_cast %225 : vector<1x8x128xf32> to vector<8x128xf32>
    %227 = arith.mulf %222, %222 : vector<8x128xf32>
    %228 = arith.mulf %224, %224 : vector<8x128xf32>
    %229 = arith.addf %227, %228 : vector<8x128xf32>
    %230 = arith.mulf %226, %226 : vector<8x128xf32>
    %231 = arith.addf %229, %230 : vector<8x128xf32>
    %232 = vector.broadcast %26 : vector<8x1xf32> to vector<8x128xf32>
    %233 = arith.addf %231, %232 : vector<8x128xf32>
    %234 = vector.broadcast %11 : vector<8x1xf32> to vector<8x128xf32>
    %235 = arith.mulf %222, %234 : vector<8x128xf32>
    %236 = vector.broadcast %13 : vector<8x1xf32> to vector<8x128xf32>
    %237 = arith.mulf %224, %236 : vector<8x128xf32>
    %238 = arith.addf %235, %237 : vector<8x128xf32>
    %239 = vector.broadcast %15 : vector<8x1xf32> to vector<8x128xf32>
    %240 = arith.mulf %226, %239 : vector<8x128xf32>
    %241 = arith.addf %238, %240 : vector<8x128xf32>
    %cst_72 = arith.constant 2.000000e+00 : f32
    %242 = vector.broadcast %cst_72 : f32 to vector<8x128xf32>
    %243 = arith.mulf %242, %241 : vector<8x128xf32>
    %244 = arith.subf %233, %243 : vector<8x128xf32>
    %245 = vector.broadcast %31 : vector<8x1xf32> to vector<8x128xf32>
    %246 = arith.addf %231, %245 : vector<8x128xf32>
    %247 = vector.broadcast %17 : vector<8x1xf32> to vector<8x128xf32>
    %248 = arith.mulf %222, %247 : vector<8x128xf32>
    %249 = vector.broadcast %19 : vector<8x1xf32> to vector<8x128xf32>
    %250 = arith.mulf %224, %249 : vector<8x128xf32>
    %251 = arith.addf %248, %250 : vector<8x128xf32>
    %252 = vector.broadcast %21 : vector<8x1xf32> to vector<8x128xf32>
    %253 = arith.mulf %226, %252 : vector<8x128xf32>
    %254 = arith.addf %251, %253 : vector<8x128xf32>
    %cst_73 = arith.constant 2.000000e+00 : f32
    %255 = vector.broadcast %cst_73 : f32 to vector<8x128xf32>
    %256 = arith.mulf %255, %254 : vector<8x128xf32>
    %257 = arith.subf %246, %256 : vector<8x128xf32>
    %cst_74 = arith.constant 0.000000e+00 : f32
    %258 = vector.broadcast %cst_74 : f32 to vector<8x128xf32>
    %259 = arith.cmpf ogt, %244, %258 : vector<8x128xf32>
    %cst_75 = arith.constant 0.000000e+00 : f32
    %260 = vector.broadcast %cst_75 : f32 to vector<8x128xf32>
    %261 = arith.select %259, %244, %260 : vector<8x128xi1>, vector<8x128xf32>
    %cst_76 = arith.constant 0.000000e+00 : f32
    %262 = vector.broadcast %cst_76 : f32 to vector<8x128xf32>
    %263 = arith.cmpf ogt, %257, %262 : vector<8x128xf32>
    %cst_77 = arith.constant 0.000000e+00 : f32
    %264 = vector.broadcast %cst_77 : f32 to vector<8x128xf32>
    %265 = arith.select %263, %257, %264 : vector<8x128xi1>, vector<8x128xf32>
    %266 = arith.minimumf %218, %261 : vector<8x128xf32>
    %267 = arith.addf %219, %261 : vector<8x128xf32>
    %268 = arith.addf %220, %265 : vector<8x128xf32>
    %c15 = arith.constant 15 : index
    %c0_78 = arith.constant 0 : index
    %c0_79 = arith.constant 0 : index
    %269 = vector.load %arg1[%c15, %c0_78, %c0_79] : memref<27x8x128xf32, #tpu.memory_space<vmem>>, vector<1x8x128xf32>
    %270 = vector.shape_cast %269 : vector<1x8x128xf32> to vector<8x128xf32>
    %c16 = arith.constant 16 : index
    %c0_80 = arith.constant 0 : index
    %c0_81 = arith.constant 0 : index
    %271 = vector.load %arg1[%c16, %c0_80, %c0_81] : memref<27x8x128xf32, #tpu.memory_space<vmem>>, vector<1x8x128xf32>
    %272 = vector.shape_cast %271 : vector<1x8x128xf32> to vector<8x128xf32>
    %c17 = arith.constant 17 : index
    %c0_82 = arith.constant 0 : index
    %c0_83 = arith.constant 0 : index
    %273 = vector.load %arg1[%c17, %c0_82, %c0_83] : memref<27x8x128xf32, #tpu.memory_space<vmem>>, vector<1x8x128xf32>
    %274 = vector.shape_cast %273 : vector<1x8x128xf32> to vector<8x128xf32>
    %275 = arith.mulf %270, %270 : vector<8x128xf32>
    %276 = arith.mulf %272, %272 : vector<8x128xf32>
    %277 = arith.addf %275, %276 : vector<8x128xf32>
    %278 = arith.mulf %274, %274 : vector<8x128xf32>
    %279 = arith.addf %277, %278 : vector<8x128xf32>
    %280 = vector.broadcast %26 : vector<8x1xf32> to vector<8x128xf32>
    %281 = arith.addf %279, %280 : vector<8x128xf32>
    %282 = vector.broadcast %11 : vector<8x1xf32> to vector<8x128xf32>
    %283 = arith.mulf %270, %282 : vector<8x128xf32>
    %284 = vector.broadcast %13 : vector<8x1xf32> to vector<8x128xf32>
    %285 = arith.mulf %272, %284 : vector<8x128xf32>
    %286 = arith.addf %283, %285 : vector<8x128xf32>
    %287 = vector.broadcast %15 : vector<8x1xf32> to vector<8x128xf32>
    %288 = arith.mulf %274, %287 : vector<8x128xf32>
    %289 = arith.addf %286, %288 : vector<8x128xf32>
    %cst_84 = arith.constant 2.000000e+00 : f32
    %290 = vector.broadcast %cst_84 : f32 to vector<8x128xf32>
    %291 = arith.mulf %290, %289 : vector<8x128xf32>
    %292 = arith.subf %281, %291 : vector<8x128xf32>
    %293 = vector.broadcast %31 : vector<8x1xf32> to vector<8x128xf32>
    %294 = arith.addf %279, %293 : vector<8x128xf32>
    %295 = vector.broadcast %17 : vector<8x1xf32> to vector<8x128xf32>
    %296 = arith.mulf %270, %295 : vector<8x128xf32>
    %297 = vector.broadcast %19 : vector<8x1xf32> to vector<8x128xf32>
    %298 = arith.mulf %272, %297 : vector<8x128xf32>
    %299 = arith.addf %296, %298 : vector<8x128xf32>
    %300 = vector.broadcast %21 : vector<8x1xf32> to vector<8x128xf32>
    %301 = arith.mulf %274, %300 : vector<8x128xf32>
    %302 = arith.addf %299, %301 : vector<8x128xf32>
    %cst_85 = arith.constant 2.000000e+00 : f32
    %303 = vector.broadcast %cst_85 : f32 to vector<8x128xf32>
    %304 = arith.mulf %303, %302 : vector<8x128xf32>
    %305 = arith.subf %294, %304 : vector<8x128xf32>
    %cst_86 = arith.constant 0.000000e+00 : f32
    %306 = vector.broadcast %cst_86 : f32 to vector<8x128xf32>
    %307 = arith.cmpf ogt, %292, %306 : vector<8x128xf32>
    %cst_87 = arith.constant 0.000000e+00 : f32
    %308 = vector.broadcast %cst_87 : f32 to vector<8x128xf32>
    %309 = arith.select %307, %292, %308 : vector<8x128xi1>, vector<8x128xf32>
    %cst_88 = arith.constant 0.000000e+00 : f32
    %310 = vector.broadcast %cst_88 : f32 to vector<8x128xf32>
    %311 = arith.cmpf ogt, %305, %310 : vector<8x128xf32>
    %cst_89 = arith.constant 0.000000e+00 : f32
    %312 = vector.broadcast %cst_89 : f32 to vector<8x128xf32>
    %313 = arith.select %311, %305, %312 : vector<8x128xi1>, vector<8x128xf32>
    %314 = arith.minimumf %266, %309 : vector<8x128xf32>
    %315 = arith.addf %267, %309 : vector<8x128xf32>
    %316 = arith.addf %268, %313 : vector<8x128xf32>
    %c18 = arith.constant 18 : index
    %c0_90 = arith.constant 0 : index
    %c0_91 = arith.constant 0 : index
    %317 = vector.load %arg1[%c18, %c0_90, %c0_91] : memref<27x8x128xf32, #tpu.memory_space<vmem>>, vector<1x8x128xf32>
    %318 = vector.shape_cast %317 : vector<1x8x128xf32> to vector<8x128xf32>
    %c19 = arith.constant 19 : index
    %c0_92 = arith.constant 0 : index
    %c0_93 = arith.constant 0 : index
    %319 = vector.load %arg1[%c19, %c0_92, %c0_93] : memref<27x8x128xf32, #tpu.memory_space<vmem>>, vector<1x8x128xf32>
    %320 = vector.shape_cast %319 : vector<1x8x128xf32> to vector<8x128xf32>
    %c20 = arith.constant 20 : index
    %c0_94 = arith.constant 0 : index
    %c0_95 = arith.constant 0 : index
    %321 = vector.load %arg1[%c20, %c0_94, %c0_95] : memref<27x8x128xf32, #tpu.memory_space<vmem>>, vector<1x8x128xf32>
    %322 = vector.shape_cast %321 : vector<1x8x128xf32> to vector<8x128xf32>
    %323 = arith.mulf %318, %318 : vector<8x128xf32>
    %324 = arith.mulf %320, %320 : vector<8x128xf32>
    %325 = arith.addf %323, %324 : vector<8x128xf32>
    %326 = arith.mulf %322, %322 : vector<8x128xf32>
    %327 = arith.addf %325, %326 : vector<8x128xf32>
    %328 = vector.broadcast %26 : vector<8x1xf32> to vector<8x128xf32>
    %329 = arith.addf %327, %328 : vector<8x128xf32>
    %330 = vector.broadcast %11 : vector<8x1xf32> to vector<8x128xf32>
    %331 = arith.mulf %318, %330 : vector<8x128xf32>
    %332 = vector.broadcast %13 : vector<8x1xf32> to vector<8x128xf32>
    %333 = arith.mulf %320, %332 : vector<8x128xf32>
    %334 = arith.addf %331, %333 : vector<8x128xf32>
    %335 = vector.broadcast %15 : vector<8x1xf32> to vector<8x128xf32>
    %336 = arith.mulf %322, %335 : vector<8x128xf32>
    %337 = arith.addf %334, %336 : vector<8x128xf32>
    %cst_96 = arith.constant 2.000000e+00 : f32
    %338 = vector.broadcast %cst_96 : f32 to vector<8x128xf32>
    %339 = arith.mulf %338, %337 : vector<8x128xf32>
    %340 = arith.subf %329, %339 : vector<8x128xf32>
    %341 = vector.broadcast %31 : vector<8x1xf32> to vector<8x128xf32>
    %342 = arith.addf %327, %341 : vector<8x128xf32>
    %343 = vector.broadcast %17 : vector<8x1xf32> to vector<8x128xf32>
    %344 = arith.mulf %318, %343 : vector<8x128xf32>
    %345 = vector.broadcast %19 : vector<8x1xf32> to vector<8x128xf32>
    %346 = arith.mulf %320, %345 : vector<8x128xf32>
    %347 = arith.addf %344, %346 : vector<8x128xf32>
    %348 = vector.broadcast %21 : vector<8x1xf32> to vector<8x128xf32>
    %349 = arith.mulf %322, %348 : vector<8x128xf32>
    %350 = arith.addf %347, %349 : vector<8x128xf32>
    %cst_97 = arith.constant 2.000000e+00 : f32
    %351 = vector.broadcast %cst_97 : f32 to vector<8x128xf32>
    %352 = arith.mulf %351, %350 : vector<8x128xf32>
    %353 = arith.subf %342, %352 : vector<8x128xf32>
    %cst_98 = arith.constant 0.000000e+00 : f32
    %354 = vector.broadcast %cst_98 : f32 to vector<8x128xf32>
    %355 = arith.cmpf ogt, %340, %354 : vector<8x128xf32>
    %cst_99 = arith.constant 0.000000e+00 : f32
    %356 = vector.broadcast %cst_99 : f32 to vector<8x128xf32>
    %357 = arith.select %355, %340, %356 : vector<8x128xi1>, vector<8x128xf32>
    %cst_100 = arith.constant 0.000000e+00 : f32
    %358 = vector.broadcast %cst_100 : f32 to vector<8x128xf32>
    %359 = arith.cmpf ogt, %353, %358 : vector<8x128xf32>
    %cst_101 = arith.constant 0.000000e+00 : f32
    %360 = vector.broadcast %cst_101 : f32 to vector<8x128xf32>
    %361 = arith.select %359, %353, %360 : vector<8x128xi1>, vector<8x128xf32>
    %362 = arith.minimumf %314, %357 : vector<8x128xf32>
    %363 = arith.addf %315, %357 : vector<8x128xf32>
    %364 = arith.addf %316, %361 : vector<8x128xf32>
    %c21 = arith.constant 21 : index
    %c0_102 = arith.constant 0 : index
    %c0_103 = arith.constant 0 : index
    %365 = vector.load %arg1[%c21, %c0_102, %c0_103] : memref<27x8x128xf32, #tpu.memory_space<vmem>>, vector<1x8x128xf32>
    %366 = vector.shape_cast %365 : vector<1x8x128xf32> to vector<8x128xf32>
    %c22 = arith.constant 22 : index
    %c0_104 = arith.constant 0 : index
    %c0_105 = arith.constant 0 : index
    %367 = vector.load %arg1[%c22, %c0_104, %c0_105] : memref<27x8x128xf32, #tpu.memory_space<vmem>>, vector<1x8x128xf32>
    %368 = vector.shape_cast %367 : vector<1x8x128xf32> to vector<8x128xf32>
    %c23 = arith.constant 23 : index
    %c0_106 = arith.constant 0 : index
    %c0_107 = arith.constant 0 : index
    %369 = vector.load %arg1[%c23, %c0_106, %c0_107] : memref<27x8x128xf32, #tpu.memory_space<vmem>>, vector<1x8x128xf32>
    %370 = vector.shape_cast %369 : vector<1x8x128xf32> to vector<8x128xf32>
    %371 = arith.mulf %366, %366 : vector<8x128xf32>
    %372 = arith.mulf %368, %368 : vector<8x128xf32>
    %373 = arith.addf %371, %372 : vector<8x128xf32>
    %374 = arith.mulf %370, %370 : vector<8x128xf32>
    %375 = arith.addf %373, %374 : vector<8x128xf32>
    %376 = vector.broadcast %26 : vector<8x1xf32> to vector<8x128xf32>
    %377 = arith.addf %375, %376 : vector<8x128xf32>
    %378 = vector.broadcast %11 : vector<8x1xf32> to vector<8x128xf32>
    %379 = arith.mulf %366, %378 : vector<8x128xf32>
    %380 = vector.broadcast %13 : vector<8x1xf32> to vector<8x128xf32>
    %381 = arith.mulf %368, %380 : vector<8x128xf32>
    %382 = arith.addf %379, %381 : vector<8x128xf32>
    %383 = vector.broadcast %15 : vector<8x1xf32> to vector<8x128xf32>
    %384 = arith.mulf %370, %383 : vector<8x128xf32>
    %385 = arith.addf %382, %384 : vector<8x128xf32>
    %cst_108 = arith.constant 2.000000e+00 : f32
    %386 = vector.broadcast %cst_108 : f32 to vector<8x128xf32>
    %387 = arith.mulf %386, %385 : vector<8x128xf32>
    %388 = arith.subf %377, %387 : vector<8x128xf32>
    %389 = vector.broadcast %31 : vector<8x1xf32> to vector<8x128xf32>
    %390 = arith.addf %375, %389 : vector<8x128xf32>
    %391 = vector.broadcast %17 : vector<8x1xf32> to vector<8x128xf32>
    %392 = arith.mulf %366, %391 : vector<8x128xf32>
    %393 = vector.broadcast %19 : vector<8x1xf32> to vector<8x128xf32>
    %394 = arith.mulf %368, %393 : vector<8x128xf32>
    %395 = arith.addf %392, %394 : vector<8x128xf32>
    %396 = vector.broadcast %21 : vector<8x1xf32> to vector<8x128xf32>
    %397 = arith.mulf %370, %396 : vector<8x128xf32>
    %398 = arith.addf %395, %397 : vector<8x128xf32>
    %cst_109 = arith.constant 2.000000e+00 : f32
    %399 = vector.broadcast %cst_109 : f32 to vector<8x128xf32>
    %400 = arith.mulf %399, %398 : vector<8x128xf32>
    %401 = arith.subf %390, %400 : vector<8x128xf32>
    %cst_110 = arith.constant 0.000000e+00 : f32
    %402 = vector.broadcast %cst_110 : f32 to vector<8x128xf32>
    %403 = arith.cmpf ogt, %388, %402 : vector<8x128xf32>
    %cst_111 = arith.constant 0.000000e+00 : f32
    %404 = vector.broadcast %cst_111 : f32 to vector<8x128xf32>
    %405 = arith.select %403, %388, %404 : vector<8x128xi1>, vector<8x128xf32>
    %cst_112 = arith.constant 0.000000e+00 : f32
    %406 = vector.broadcast %cst_112 : f32 to vector<8x128xf32>
    %407 = arith.cmpf ogt, %401, %406 : vector<8x128xf32>
    %cst_113 = arith.constant 0.000000e+00 : f32
    %408 = vector.broadcast %cst_113 : f32 to vector<8x128xf32>
    %409 = arith.select %407, %401, %408 : vector<8x128xi1>, vector<8x128xf32>
    %410 = arith.minimumf %362, %405 : vector<8x128xf32>
    %411 = arith.addf %363, %405 : vector<8x128xf32>
    %412 = arith.addf %364, %409 : vector<8x128xf32>
    %c24 = arith.constant 24 : index
    %c0_114 = arith.constant 0 : index
    %c0_115 = arith.constant 0 : index
    %413 = vector.load %arg1[%c24, %c0_114, %c0_115] : memref<27x8x128xf32, #tpu.memory_space<vmem>>, vector<1x8x128xf32>
    %414 = vector.shape_cast %413 : vector<1x8x128xf32> to vector<8x128xf32>
    %c25 = arith.constant 25 : index
    %c0_116 = arith.constant 0 : index
    %c0_117 = arith.constant 0 : index
    %415 = vector.load %arg1[%c25, %c0_116, %c0_117] : memref<27x8x128xf32, #tpu.memory_space<vmem>>, vector<1x8x128xf32>
    %416 = vector.shape_cast %415 : vector<1x8x128xf32> to vector<8x128xf32>
    %c26 = arith.constant 26 : index
    %c0_118 = arith.constant 0 : index
    %c0_119 = arith.constant 0 : index
    %417 = vector.load %arg1[%c26, %c0_118, %c0_119] : memref<27x8x128xf32, #tpu.memory_space<vmem>>, vector<1x8x128xf32>
    %418 = vector.shape_cast %417 : vector<1x8x128xf32> to vector<8x128xf32>
    %419 = arith.mulf %414, %414 : vector<8x128xf32>
    %420 = arith.mulf %416, %416 : vector<8x128xf32>
    %421 = arith.addf %419, %420 : vector<8x128xf32>
    %422 = arith.mulf %418, %418 : vector<8x128xf32>
    %423 = arith.addf %421, %422 : vector<8x128xf32>
    %424 = vector.broadcast %26 : vector<8x1xf32> to vector<8x128xf32>
    %425 = arith.addf %423, %424 : vector<8x128xf32>
    %426 = vector.broadcast %11 : vector<8x1xf32> to vector<8x128xf32>
    %427 = arith.mulf %414, %426 : vector<8x128xf32>
    %428 = vector.broadcast %13 : vector<8x1xf32> to vector<8x128xf32>
    %429 = arith.mulf %416, %428 : vector<8x128xf32>
    %430 = arith.addf %427, %429 : vector<8x128xf32>
    %431 = vector.broadcast %15 : vector<8x1xf32> to vector<8x128xf32>
    %432 = arith.mulf %418, %431 : vector<8x128xf32>
    %433 = arith.addf %430, %432 : vector<8x128xf32>
    %cst_120 = arith.constant 2.000000e+00 : f32
    %434 = vector.broadcast %cst_120 : f32 to vector<8x128xf32>
    %435 = arith.mulf %434, %433 : vector<8x128xf32>
    %436 = arith.subf %425, %435 : vector<8x128xf32>
    %437 = vector.broadcast %31 : vector<8x1xf32> to vector<8x128xf32>
    %438 = arith.addf %423, %437 : vector<8x128xf32>
    %439 = vector.broadcast %17 : vector<8x1xf32> to vector<8x128xf32>
    %440 = arith.mulf %414, %439 : vector<8x128xf32>
    %441 = vector.broadcast %19 : vector<8x1xf32> to vector<8x128xf32>
    %442 = arith.mulf %416, %441 : vector<8x128xf32>
    %443 = arith.addf %440, %442 : vector<8x128xf32>
    %444 = vector.broadcast %21 : vector<8x1xf32> to vector<8x128xf32>
    %445 = arith.mulf %418, %444 : vector<8x128xf32>
    %446 = arith.addf %443, %445 : vector<8x128xf32>
    %cst_121 = arith.constant 2.000000e+00 : f32
    %447 = vector.broadcast %cst_121 : f32 to vector<8x128xf32>
    %448 = arith.mulf %447, %446 : vector<8x128xf32>
    %449 = arith.subf %438, %448 : vector<8x128xf32>
    %cst_122 = arith.constant 0.000000e+00 : f32
    %450 = vector.broadcast %cst_122 : f32 to vector<8x128xf32>
    %451 = arith.cmpf ogt, %436, %450 : vector<8x128xf32>
    %cst_123 = arith.constant 0.000000e+00 : f32
    %452 = vector.broadcast %cst_123 : f32 to vector<8x128xf32>
    %453 = arith.select %451, %436, %452 : vector<8x128xi1>, vector<8x128xf32>
    %cst_124 = arith.constant 0.000000e+00 : f32
    %454 = vector.broadcast %cst_124 : f32 to vector<8x128xf32>
    %455 = arith.cmpf ogt, %449, %454 : vector<8x128xf32>
    %cst_125 = arith.constant 0.000000e+00 : f32
    %456 = vector.broadcast %cst_125 : f32 to vector<8x128xf32>
    %457 = arith.select %455, %449, %456 : vector<8x128xi1>, vector<8x128xf32>
    %458 = arith.minimumf %410, %453 : vector<8x128xf32>
    %459 = arith.addf %411, %453 : vector<8x128xf32>
    %460 = arith.addf %412, %457 : vector<8x128xf32>
    %cst_126 = arith.constant 0.111111112 : f32
    %461 = vector.broadcast %cst_126 : f32 to vector<8x128xf32>
    %462 = arith.mulf %459, %461 : vector<8x128xf32>
    %cst_127 = arith.constant 0.111111112 : f32
    %463 = vector.broadcast %cst_127 : f32 to vector<8x128xf32>
    %464 = arith.mulf %460, %463 : vector<8x128xf32>
    %cst_128 = arith.constant 0.000000e+00 : f32
    %465 = vector.broadcast %cst_128 : f32 to vector<8x128xf32>
    %466 = arith.select %9, %458, %465 : vector<8x128xi1>, vector<8x128xf32>
    %467 = vector.shape_cast %466 : vector<8x128xf32> to vector<1x8x128xf32>
    %cst_129 = arith.constant dense<0.000000e+00> : vector<1xf32>
    %468 = vector.multi_reduction <add>, %467, %cst_129 [1, 2] : vector<1x8x128xf32> to vector<1xf32>
    %469 = vector.shape_cast %468 : vector<1xf32> to vector<1x1x1xf32>
    %470 = vector.extract %469[0, 0, 0] : f32 from vector<1x1x1xf32>
    %471 = arith.subf %462, %464 : vector<8x128xf32>
    %cst_130 = arith.constant 1.000000e+00 : f32
    %472 = vector.broadcast %cst_130 : f32 to vector<8x128xf32>
    %473 = arith.addf %471, %472 : vector<8x128xf32>
    %cst_131 = arith.constant -1.000000e+30 : f32
    %474 = vector.broadcast %cst_131 : f32 to vector<8x128xf32>
    %475 = arith.select %9, %473, %474 : vector<8x128xi1>, vector<8x128xf32>
    %cst_132 = arith.constant dense<0xFF800000> : vector<8xf32>
    %476 = vector.multi_reduction <maximumf>, %475, %cst_132 [1] : vector<8x128xf32> to vector<8xf32>
    %477 = vector.shape_cast %476 : vector<8xf32> to vector<8x1xf32>
    %cst_133 = arith.constant 0.000000e+00 : f32
    %478 = vector.broadcast %cst_133 : f32 to vector<8x1xf32>
    %479 = arith.maximumf %477, %478 : vector<8x1xf32>
    %480 = vector.shape_cast %479 : vector<8x1xf32> to vector<1x8x1xf32>
    %cst_134 = arith.constant dense<0.000000e+00> : vector<1xf32>
    %481 = vector.multi_reduction <add>, %480, %cst_134 [1, 2] : vector<1x8x1xf32> to vector<1xf32>
    %482 = vector.shape_cast %481 : vector<1xf32> to vector<1x1x1xf32>
    %483 = vector.extract %482[0, 0, 0] : f32 from vector<1x1x1xf32>
    %484 = tpu.iota {dimensions = array<i32: 1>} : vector<1x8x128xi32>
    %c0_i32 = arith.constant 0 : i32
    %485 = vector.broadcast %c0_i32 : i32 to vector<1x8x128xi32>
    %486 = arith.cmpi eq, %484, %485 : vector<1x8x128xi32>
    %c1_i32 = arith.constant 1 : i32
    %487 = vector.broadcast %c1_i32 : i32 to vector<1x8x128xi32>
    %488 = arith.cmpi eq, %484, %487 : vector<1x8x128xi32>
    %cst_135 = arith.constant 0.000000e+00 : f32
    %489 = vector.broadcast %470 : f32 to vector<1x8x128xf32>
    %490 = vector.broadcast %cst_135 : f32 to vector<1x8x128xf32>
    %491 = arith.select %488, %489, %490 : vector<1x8x128xi1>, vector<1x8x128xf32>
    %492 = vector.broadcast %483 : f32 to vector<1x8x128xf32>
    %493 = arith.select %486, %492, %491 : vector<1x8x128xi1>, vector<1x8x128xf32>
    %c0_136 = arith.constant 0 : index
    %c0_137 = arith.constant 0 : index
    %c0_138 = arith.constant 0 : index
    %494 = vector.load %arg4[%c0_136, %c0_137, %c0_138] : memref<1x8x128xf32, #tpu.memory_space<vmem>>, vector<1x8x128xf32>
    tpu.vector_store %arg4[%c0_136, %c0_137, %c0_138], %493 {strides = array<i32>} : memref<1x8x128xf32, #tpu.memory_space<vmem>>, vector<1x8x128xf32>,
    return
  }
  func.func @transform_0(%arg0: i32) -> (i32, i32, i32) {
    %c0_i32 = arith.constant 0 : i32
    %c0_i32_0 = arith.constant 0 : i32
    %c0_i32_1 = arith.constant 0 : i32
    return %c0_i32, %arg0, %c0_i32_0 : i32, i32, i32
  }
  func.func @transform_1(%arg0: i32) -> (i32, i32, i32) {
    %c0_i32 = arith.constant 0 : i32
    %c0_i32_0 = arith.constant 0 : i32
    %c0_i32_1 = arith.constant 0 : i32
    return %c0_i32, %arg0, %c0_i32_0 : i32, i32, i32
  }
  func.func @transform_2(%arg0: i32) -> (i32, i32, i32) {
    %c0_i32 = arith.constant 0 : i32
    %c0_i32_0 = arith.constant 0 : i32
    %c0_i32_1 = arith.constant 0 : i32
    return %c0_i32, %arg0, %c0_i32_0 : i32, i32, i32
  }
  func.func @transform_3(%arg0: i32) -> (i32, i32, i32) {
    %c0_i32 = arith.constant 0 : i32
    %c0_i32_0 = arith.constant 0 : i32
    %c0_i32_1 = arith.constant 0 : i32
    return %arg0, %c0_i32, %c0_i32_0 : i32, i32, i32
  }
}

</mosaic_0001>

<bundles_post_ra>
// kernel: ayce_loss.1
= control target key start
LH: loop header
LB: loop body
LE: loop exit
PB: predicated region body
PF: predicated region fallthrough
CT: control target
= control target key end

     0   :  { %v463_v0 = vmov 0   ;;  %s922_s2 = inlined_call_operand.vmem [shape: f32[3,8,1], index: 2, kind: input, shape index: {}]   ;;  %s923_s1 = inlined_call_operand.vmem [shape: f32[3,8,1], index: 1, kind: input, shape index: {}]   ;;  %s924_s0 = inlined_call_operand.vmem [shape: f32[27,8,128], index: 0, kind: input, shape index: {}]   ;;  %s925_s3 = inlined_call_operand.vmem [shape: f32[1,8,128], index: 3, kind: output, shape index: {}]  }
   0x1   :  { %462 = vset.pattern.permute.xlu1 %v463_v0  ;;  %461 = vset.pattern.permute.xlu0 %v463_v0  ;;  %v29_v1 = vld [vmem:[%s922_s2] sm:$0xff]  ;;  %v428_v3 = vld [vmem:[%s922_s2 + $0x8] sm:$0xff]  ;;  %v429_v8 = vld [vmem:[%s922_s2 + $0x10] sm:$0xff] }
   0x2   :  { %v24_v2 = vld [vmem:[%s923_s1] sm:$0xff]  ;;  %90 = vperm.xlu1 %462, %v29_v1   ;;  %v39_v4 = vmul.f32 %v29_v1, %v29_v1  ;;  %v40_v6 = vmul.f32 %v428_v3, %v428_v3  ;;  %v426_v7 = vld [vmem:[%s923_s1 + $0x8] sm:$0xff]  ;;  %v427_v10 = vld [vmem:[%s923_s1 + $0x10] sm:$0xff]  ;;  %v42_v11 = vmul.f32 %v429_v8, %v429_v8 }
   0x3   :  { %62 = vperm.xlu0 %461, %v24_v2   ;;  %v34_v5 = vmul.f32 %v24_v2, %v24_v2  ;;  %v35_v9 = vmul.f32 %v426_v7, %v426_v7  ;;  %v37_v14 = vmul.f32 %v427_v10, %v427_v10  ;;  %v505_v17 = vld [vmem:[%s924_s0] sm:$0xff]  ;;  %v510_v18 = vld [vmem:[%s924_s0 + $0x8] sm:$0xff]  ;;  %v515_v19 = vld [vmem:[%s924_s0 + $0x18] sm:$0xff] }
   0x4   :  { %v41_v12 = vadd.f32 %v40_v6, %v39_v4  ;;  %v520_v20 = vld [vmem:[%s924_s0 + $0x20] sm:$0xff]  ;;  %v49_v21 = vmul.f32 %v505_v17, %v505_v17  ;;  %v50_v22 = vmul.f32 %v510_v18, %v510_v18  ;;  %v529_v23 = vld [vmem:[%s924_s0 + $0x30] sm:$0xff]  ;;  %v120_v25 = vmul.f32 %v515_v19, %v515_v19  ;;  %v543_v27 = vld [vmem:[%s924_s0 + $0x48] sm:$0xff] }
   0x5   :  { %v36_v13 = vadd.f32 %v35_v9, %v34_v5  ;;  %v534_v24 = vld [vmem:[%s924_s0 + $0x10] sm:$0xff]  ;;  %v121_v26 = vmul.f32 %v520_v20, %v520_v20  ;;  %v548_v28 = vld [vmem:[%s924_s0 + $0x38] sm:$0xff]  ;;  %v558_v30 = vld [vmem:[%s924_s0 + $0x60] sm:$0xff]  ;;  %v154_v31 = vmul.f32 %v529_v23, %v529_v23  ;;  %v188_v42 = vmul.f32 %v543_v27, %v543_v27 }
   0x6   :  { %96 = vperm.xlu1 %462, %v428_v3   ;;  %v43_v15 = vadd.f32 %v42_v11, %v41_v12  ;;  %v553_v29 = vld [vmem:[%s924_s0 + $0x50] sm:$0xff]  ;;  %v565_v32 = vld [vmem:[%s924_s0 + $0x68] sm:$0xff]  ;;  %v570_v33 = vld [vmem:[%s924_s0 + $0x78] sm:$0xff]  ;;  %v51_v37 = vadd.f32 %v50_v22, %v49_v21  ;;  %v52_v38 = vmul.f32 %v534_v24, %v534_v24  ;;  %v155_v40 = vmul.f32 %v548_v28, %v548_v28 }
   0x7   :  { %68 = vperm.xlu0 %461, %v426_v7   ;;  %v38_v16 = vadd.f32 %v37_v14, %v36_v13  ;;  %v575_v34 = vld [vmem:[%s924_s0 + $0x80] sm:$0xff]  ;;  %v580_v35 = vld [vmem:[%s924_s0 + $0x90] sm:$0xff]  ;;  %v585_v36 = vld [vmem:[%s924_s0 + $0x28] sm:$0xff]  ;;  %v122_v43 = vadd.f32 %v121_v26, %v120_v25  ;;  %v189_v44 = vmul.f32 %v553_v29, %v553_v29  ;;  %v222_v46 = vmul.f32 %v558_v30, %v558_v30 }
   0x8   :  { %v592_v39 = vld [vmem:[%s924_s0 + $0x40] sm:$0xff]  ;;  %v599_v41 = vld [vmem:[%s924_s0 + $0x58] sm:$0xff]  ;;  %v608_v45 = vld [vmem:[%s924_s0 + $0x70] sm:$0xff]  ;;  %v223_v47 = vmul.f32 %v565_v32, %v565_v32  ;;  %v256_v50 = vmul.f32 %v570_v33, %v570_v33  ;;  %v257_v51 = vmul.f32 %v575_v34, %v575_v34  ;;  %v290_v52 = vmul.f32 %v580_v35, %v580_v35 }
   0x9   :  { %v617_v48 = vld [vmem:[%s924_s0 + $0x98] sm:$0xff]  ;;  %v622_v49 = vld [vmem:[%s924_s0 + $0xa8] sm:$0xff]  ;;  %v635_v54 = vld [vmem:[%s924_s0 + $0xb0] sm:$0xff]  ;;  %v123_v63 = vmul.f32 %v585_v36, %v585_v36  ;;  %v156_v0 = vadd.f32 %v155_v40, %v154_v31  ;;  %v157_v1 = vmul.f32 %v592_v39, %v592_v39  ;;  %v191_v2 = vmul.f32 %v599_v41, %v599_v41 }
   0xa   :  { %103 = vperm.xlu1 %462, %v429_v8   ;;  %930 = vst [vmem:[#allocation2_spill] sm:$0xff] %v617_v48  ;;  %931 = vst [vmem:[#allocation3_spill] sm:$0xff] %v622_v49  ;;  %v291_v53 = vmul.f32 %v617_v48, %v617_v48  ;;  %v640_v55 = vld [vmem:[%s924_s0 + $0xc0] sm:$0xff]  ;;  %v645_v56 = vld [vmem:[%s924_s0 + $0xc8] sm:$0xff]  ;;  %v324_v59 = vmul.f32 %v622_v49, %v622_v49  ;;  %v325_v60 = vmul.f32 %v635_v54, %v635_v54  ;;  %v15_v5 = vlaneseq }
   0xb   :  { %75 = vperm.xlu0 %461, %v427_v10   ;;  %932 = vst [vmem:[#allocation4_spill] sm:$0xff] %v640_v55  ;;  %v650_v57 = vld [vmem:[%s924_s0 + $0x88] sm:$0xff]  ;;  %v655_v58 = vld [vmem:[%s924_s0 + $0xa0] sm:$0xff]  ;;  %v358_v61 = vmul.f32 %v640_v55, %v640_v55  ;;  %v359_v62 = vmul.f32 %v645_v56, %v645_v56  ;;  %v674_v3 = vld [vmem:[%s924_s0 + $0xb8] sm:$0xff]  ;;  %v190_v6 = vadd.f32 %v189_v44, %v188_v42 }
   0xc   :  { %933 = vst [vmem:[#allocation5_spill] sm:$0xff] %v650_v57  ;;  %v679_v4 = vld [vmem:[%s924_s0 + $0xd0] sm:$0xff]  ;;  %v224_v7 = vadd.f32 %v223_v47, %v222_v46  ;;  %v225_v8 = vmul.f32 %v608_v45, %v608_v45  ;;  %v258_v9 = vadd.f32 %v257_v51, %v256_v50  ;;  %v259_v10 = vmul.f32 %v650_v57, %v650_v57 }
   0xd   :  { %v292_v11 = vadd.f32 %v291_v53, %v290_v52  ;;  %v293_v12 = vmul.f32 %v655_v58, %v655_v58  ;;  %v326_v13 = vadd.f32 %v325_v60, %v324_v59  ;;  %v327_v14 = vmul.f32 %v674_v3, %v674_v3 }
   0xe   :  { %84 = vperm.xlu1 %462, %v43_v15   ;;  %v360_v15 = vadd.f32 %v359_v62, %v358_v61  ;;  %v691_v21 = vand.u32 127, %v15_v5  ;;  %v693_v22 = vadd.f32 %v52_v38, %v51_v37  ;;  %v695_v25 = vadd.f32 %v123_v63, %v122_v43 }
   0xf   :  { %56 = vperm.xlu0 %461, %v38_v16   ;;  %v361_v16 = vmul.f32 %v679_v4, %v679_v4  ;;  %v697_v26 = vadd.f32 %v157_v1, %v156_v0  ;;  %v701_v42 = vshrl.u32 %v15_v5, 7  ;;  %v703_v44 = vadd.f32 %v191_v2, %v190_v6 }
  0x10   :  { %v705_v46 = vadd.f32 %v225_v8, %v224_v7  ;;  %v707_v47 = vadd.f32 %v259_v10, %v258_v9  ;;  %v711_v37 = vadd.f32 %v293_v12, %v292_v11  ;;  %v713_v38 = vadd.f32 %v327_v14, %v326_v13 }
  0x11   :  { %v715_v43 = vadd.f32 %v361_v16, %v360_v15  ;;  %vm19_vm5 = vcmp.lt.s32.totalorder %v691_v21, 2  ;;  %vm22_vm6 = vcmp.lt.s32.totalorder %v701_v42, 2 }
  0x12   :  { %vm863_vm13 = vmand %vm19_vm5, %vm22_vm6  ;;  %vm404_vm5 = vcmask 7168   ;;  %vm416_vm6 = vcmp.eq.s32.totalorder %v701_v42, 1 }
  0x81   :  { %v699_v31 = vpop.permute.xlu1 %90 }
  0x82   :  { %v63_v40 = vpop.permute.xlu0 %62  ;;  %v93_v50 = vmul.f32 %v699_v31, %v505_v17  ;;  %v134_v51 = vmul.f32 %v515_v19, %v699_v31  ;;  %v721_v52 = vmul.f32 %v529_v23, %v699_v31  ;;  %v754_v8 = vmul.f32 %v558_v30, %v699_v31 }
  0x83   :  { %v65_v53 = vmul.f32 %v63_v40, %v505_v17  ;;  %v126_v59 = vmul.f32 %v515_v19, %v63_v40  ;;  %v160_v60 = vmul.f32 %v529_v23, %v63_v40  ;;  %v194_v61 = vmul.f32 %v543_v27, %v63_v40 }
  0x84   :  { %v228_v62 = vmul.f32 %v558_v30, %v63_v40  ;;  %v262_v63 = vmul.f32 %v570_v33, %v63_v40  ;;  %v734_v2 = vmul.f32 %v580_v35, %v63_v40  ;;  %v737_v5 = vmul.f32 %v622_v49, %v63_v40 }
  0x85   :  { %v729_v0 = vpop.permute.xlu1 %96  ;;  %v740_v17 = vmul.f32 %v640_v55, %v63_v40  ;;  %v744_v19 = vmul.f32 %v543_v27, %v699_v31 }
  0x86   :  { %v731_v1 = vpop.permute.xlu0 %68  ;;  %v99_v23 = vmul.f32 %v510_v18, %v729_v0  ;;  %v135_v6 = vmul.f32 %v520_v20, %v729_v0  ;;  %v237_v21 = vmul.f32 %v565_v32, %v729_v0 }
  0x87   :  { %v71_v7 = vmul.f32 %v510_v18, %v731_v1  ;;  %v127_v9 = vmul.f32 %v520_v20, %v731_v1  ;;  %v161_v27 = vmul.f32 %v548_v28, %v731_v1  ;;  %v195_v10 = vmul.f32 %v553_v29, %v731_v1 }
  0x88   :  { %v229_v11 = vmul.f32 %v565_v32, %v731_v1  ;;  %v764_v12 = vadd.f32 %v99_v23, %v93_v50  ;;  %v768_v18 = vmul.f32 %v548_v28, %v729_v0  ;;  %v263_v30 = vmul.f32 %v575_v34, %v731_v1 }
  0x89   :  { %v774_v20 = vmul.f32 %v570_v33, %v699_v31  ;;  %v776_v13 = vadd.f32 %v135_v6, %v134_v51  ;;  %v778_v14 = vpop.permute.xlu1 %103  ;;  %v72_v16 = vadd.f32 %v71_v7, %v65_v53  ;;  %v128_v40 = vadd.f32 %v127_v9, %v126_v59 }
  0x8a   :  { %v780_v15 = vpop.permute.xlu0 %75  ;;  %v162_v50 = vadd.f32 %v161_v27, %v160_v60  ;;  %v196_v55 = vadd.f32 %v195_v10, %v194_v61  ;;  %v230_v49 = vadd.f32 %v229_v11, %v228_v62  ;;  %v788_v33 = vmul.f32 %v534_v24, %v778_v14 }
  0x8b   :  { %934 = vst [vmem:[#allocation6_spill] sm:$0xff] %v774_v20  ;;  %v78_v28 = vmul.f32 %v534_v24, %v780_v15  ;;  %v129_v23 = vmul.f32 %v585_v36, %v780_v15  ;;  %v163_v51 = vmul.f32 %v592_v39, %v780_v15  ;;  %v197_v53 = vmul.f32 %v599_v41, %v780_v15 }
  0x8c   :  { %v231_v59 = vmul.f32 %v608_v45, %v780_v15  ;;  %v264_v7 = vadd.f32 %v263_v30, %v262_v63  ;;  %v265_v61 = vmul.f32 %v650_v57, %v780_v15  ;;  %v297_v10 = vmul.f32 %v617_v48, %v731_v1 }
  0x8d   :  { %v79_v60 = vadd.f32 %v78_v28, %v72_v16  ;;  %v130_v6 = vadd.f32 %v129_v23, %v128_v40  ;;  %v164_v9 = vadd.f32 %v163_v51, %v162_v50  ;;  %v198_v24 = vadd.f32 %v197_v53, %v196_v55 }
  0x8e   :  { %v798_v62 = vpop.permute.xlu0 %56  ;;  %v232_v27 = vadd.f32 %v231_v59, %v230_v49 }
  0x8f   :  { %v59_v11 = vadd.f32 %v798_v62, %v693_v22  ;;  %v80_v20 = vmul.f32 2.0, %v79_v60  ;;  %v125_v16 = vadd.f32 %v695_v25, %v798_v62  ;;  %v131_v40 = vmul.f32 2.0, %v130_v6 }
  0x90   :  { %v159_v63 = vadd.f32 %v697_v26, %v798_v62  ;;  %v165_v30 = vmul.f32 2.0, %v164_v9  ;;  %v193_v50 = vadd.f32 %v703_v44, %v798_v62  ;;  %v199_v55 = vmul.f32 2.0, %v198_v24 }
  0x91   :  { %v81_v49 = vsub.f32 %v59_v11, %v80_v20  ;;  %v132_v28 = vsub.f32 %v125_v16, %v131_v40  ;;  %v227_v23 = vadd.f32 %v705_v46, %v798_v62  ;;  %v233_v51 = vmul.f32 2.0, %v232_v27 }
  0x92   :  { %v166_v53 = vsub.f32 %v159_v63, %v165_v30  ;;  %v200_v59 = vsub.f32 %v193_v50, %v199_v55  ;;  %v266_v60 = vadd.f32 %v265_v61, %v264_v7  ;;  %v299_v6 = vmul.f32 %v655_v58, %v780_v15 }
  0x93   :  { %vm110_vm0 = vcmp.gt.f32.partialorder %v81_v49, 0.0  ;;  %vm141_vm1 = vcmp.gt.f32.partialorder %v132_v28, 0.0  ;;  %v234_v48 = vsub.f32 %v227_v23, %v233_v51  ;;  %v261_v9 = vadd.f32 %v707_v47, %v798_v62 }
  0x94   :  { %v111_v57 = vsel %vm110_vm0, %v81_v49, 0.0  ;;  %v142_v24 = vsel %vm141_vm1, %v132_v28, 0.0  ;;  %vm175_vm2 = vcmp.gt.f32.partialorder %v166_v53, 0.0  ;;  %vm209_vm3 = vcmp.gt.f32.partialorder %v200_v59, 0.0  ;;  %v823_v49 = vpop.permute.xlu1 %84 }
  0x95   :  { %v137_v20 = vmul.f32 %v585_v36, %v778_v14  ;;  %v145_v27 = vmin.f32 %v111_v57, %v142_v24  ;;  %v146_v11 = vadd.f32 %v142_v24, %v111_v57  ;;  %v295_v7 = vadd.f32 %v711_v37, %v798_v62 }
  0x96   :  { %v176_v61 = vsel %vm175_vm2, %v166_v53, 0.0  ;;  %v210_v16 = vsel %vm209_vm3, %v200_v59, 0.0  ;;  %v267_v40 = vmul.f32 2.0, %v266_v60  ;;  %v298_v63 = vadd.f32 %v297_v10, %v734_v2 }
  0x97   :  { %v179_v30 = vmin.f32 %v145_v27, %v176_v61  ;;  %v180_v50 = vadd.f32 %v176_v61, %v146_v11  ;;  %vm243_vm4 = vcmp.gt.f32.partialorder %v234_v48, 0.0  ;;  %v331_v55 = vmul.f32 %v635_v54, %v731_v1 }
  0x98   :  { %v268_v28 = vsub.f32 %v261_v9, %v267_v40  ;;  %v300_v36 = vadd.f32 %v299_v6, %v298_v63  ;;  %v329_v57 = vadd.f32 %v713_v38, %v798_v62  ;;  %v333_v23 = vmul.f32 %v674_v3, %v780_v15 }
  0x99   :  { %v213_v51 = vmin.f32 %v179_v30, %v210_v16  ;;  %v214_v53 = vadd.f32 %v210_v16, %v180_v50  ;;  %v332_v2 = vadd.f32 %v331_v55, %v737_v5  ;;  %v365_v10 = vmul.f32 %v645_v56, %v731_v1 }
  0x9a   :  { %v244_v59 = vsel %vm243_vm4, %v234_v48, 0.0  ;;  %vm277_vm7 = vcmp.gt.f32.partialorder %v268_v28, 0.0  ;;  %v301_v60 = vmul.f32 2.0, %v300_v36  ;;  %v367_v6 = vmul.f32 %v679_v4, %v780_v15 }
  0x9b   :  { %v247_v9 = vmin.f32 %v213_v51, %v244_v59  ;;  %v248_v24 = vadd.f32 %v244_v59, %v214_v53  ;;  %v334_v27 = vadd.f32 %v333_v23, %v332_v2  ;;  %v87_v11 = vadd.f32 %v823_v49, %v693_v22 }
  0x9c   :  { %v278_v5 = vsel %vm277_vm7, %v268_v28, 0.0  ;;  %v302_v61 = vsub.f32 %v295_v7, %v301_v60  ;;  %v366_v1 = vadd.f32 %v365_v10, %v740_v17  ;;  %v107_v16 = vadd.f32 %v788_v33, %v764_v12 }
  0x9d   :  { %v281_v40 = vmin.f32 %v247_v9, %v278_v5  ;;  %v335_v48 = vmul.f32 2.0, %v334_v27  ;;  %v133_v63 = vadd.f32 %v695_v25, %v823_v49  ;;  %v138_v15 = vadd.f32 %v137_v20, %v776_v13 }
  0x9e   :  { %vm311_vm8 = vcmp.gt.f32.partialorder %v302_v61, 0.0  ;;  %v363_v30 = vadd.f32 %v715_v43, %v798_v62  ;;  %v368_v50 = vadd.f32 %v367_v6, %v366_v1  ;;  %v108_v22 = vmul.f32 2.0, %v107_v16  ;;  %v937_v1 = vld [vmem:[#allocation5_spill] sm:$0xff] }
  0x9f   :  { %v312_v55 = vsel %vm311_vm8, %v302_v61, 0.0  ;;  %v336_v7 = vsub.f32 %v329_v57, %v335_v48  ;;  %v139_v28 = vmul.f32 2.0, %v138_v15  ;;  %v304_v17 = vmul.f32 %v580_v35, %v699_v31 }
  0xa0   :  { %v282_v12 = vadd.f32 %v278_v5, %v248_v24  ;;  %v315_v33 = vmin.f32 %v281_v40, %v312_v55  ;;  %v369_v36 = vmul.f32 2.0, %v368_v50  ;;  %v109_v23 = vsub.f32 %v87_v11, %v108_v22  ;;  %v938_v40 = vld [vmem:[#allocation6_spill] sm:$0xff] }
  0xa1   :  { %vm345_vm9 = vcmp.gt.f32.partialorder %v336_v7, 0.0  ;;  %v140_v25 = vsub.f32 %v133_v63, %v139_v28  ;;  %v170_v13 = vadd.f32 %v768_v18, %v721_v52  ;;  %v171_v62 = vmul.f32 %v592_v39, %v778_v14 }
  0xa2   :  { %v852_v20 = vsel %vm345_vm9, %v336_v7, 0.0  ;;  %v370_v51 = vsub.f32 %v363_v30, %v369_v36  ;;  %vm112_vm10 = vcmp.gt.f32.partialorder %v109_v23, 0.0  ;;  %v203_v57 = vmul.f32 %v553_v29, %v729_v0 }
  0xa3   :  { %v349_v35 = vmin.f32 %v315_v33, %v852_v20  ;;  %v113_v53 = vsel %vm112_vm10, %v109_v23, 0.0  ;;  %vm143_vm11 = vcmp.gt.f32.partialorder %v140_v25, 0.0  ;;  %v167_v2 = vadd.f32 %v697_v26, %v823_v49 }
  0xa4   :  { %v316_v10 = vadd.f32 %v312_v55, %v282_v12  ;;  %vm379_vm12 = vcmp.gt.f32.partialorder %v370_v51, 0.0  ;;  %v144_v52 = vsel %vm143_vm11, %v140_v25, 0.0  ;;  %v172_v18 = vadd.f32 %v171_v62, %v170_v13 }
  0xa5   :  { %v867_v29 = vsel %vm379_vm12, %v370_v51, 0.0  ;;  %v201_v59 = vadd.f32 %v703_v44, %v823_v49  ;;  %v204_v60 = vadd.f32 %v203_v57, %v744_v19  ;;  %v205_v26 = vmul.f32 %v599_v41, %v778_v14 }
  0xa6   :  { %v383_v6 = vmin.f32 %v349_v35, %v867_v29  ;;  %v147_v9 = vadd.f32 %v144_v52, %v113_v53  ;;  %v173_v24 = vmul.f32 2.0, %v172_v18  ;;  %v235_v11 = vadd.f32 %v705_v46, %v823_v49  ;;  %v941_v35 = vld [vmem:[#allocation4_spill] sm:$0xff] }
  0xa7   :  { %v206_v27 = vadd.f32 %v205_v26, %v204_v60  ;;  %v239_v5 = vmul.f32 %v608_v45, %v778_v14  ;;  %v271_v44 = vmul.f32 %v575_v34, %v729_v0  ;;  %v238_v61 = vadd.f32 %v237_v21, %v754_v8  ;;  %v939_v45 = vld [vmem:[#allocation2_spill] sm:$0xff] }
  0xa8   :  { %v388_v41 = vsel %vm863_vm13, %v383_v6, 0.0  ;;  %v174_v19 = vsub.f32 %v167_v2, %v173_v24  ;;  %v273_v16 = vmul.f32 %v937_v1, %v778_v14  ;;  %v269_v46 = vadd.f32 %v707_v47, %v823_v49  ;;  %v940_v47 = vld [vmem:[#allocation3_spill] sm:$0xff] }
  0xa9   :  { %389 = vadd.xlane.f32.xlu1 %v388_v41  ;;  %v207_v32 = vmul.f32 2.0, %v206_v27  ;;  %v272_v48 = vadd.f32 %v271_v44, %v938_v40  ;;  %v305_v63 = vmul.f32 %v939_v45, %v729_v0  ;;  %v240_v34 = vadd.f32 %v239_v5, %v238_v61 }
  0xaa   :  { %vm177_vm14 = vcmp.gt.f32.partialorder %v174_v19, 0.0  ;;  %v303_v15 = vadd.f32 %v711_v37, %v823_v49  ;;  %v307_v8 = vmul.f32 %v655_v58, %v778_v14  ;;  %v338_v12 = vmul.f32 %v940_v47, %v699_v31 }
  0xab   :  { %v178_v30 = vsel %vm177_vm14, %v174_v19, 0.0  ;;  %v208_v50 = vsub.f32 %v201_v59, %v207_v32  ;;  %v274_v22 = vadd.f32 %v273_v16, %v272_v48  ;;  %v306_v55 = vadd.f32 %v305_v63, %v304_v17 }
  0xac   :  { %v181_v7 = vadd.f32 %v178_v30, %v147_v9  ;;  %v241_v28 = vmul.f32 2.0, %v240_v34  ;;  %v339_v33 = vmul.f32 %v635_v54, %v729_v0  ;;  %v341_v37 = vmul.f32 %v674_v3, %v778_v14 }
  0xad   :  { %vm211_vm15 = vcmp.gt.f32.partialorder %v208_v50, 0.0  ;;  %v275_v36 = vmul.f32 2.0, %v274_v22  ;;  %v308_v23 = vadd.f32 %v307_v8, %v306_v55  ;;  %v337_v13 = vadd.f32 %v713_v38, %v823_v49 }
  0xae   :  { %v212_v25 = vsel %vm211_vm15, %v208_v50, 0.0  ;;  %v242_v58 = vsub.f32 %v235_v11, %v241_v28  ;;  %v340_v17 = vadd.f32 %v339_v33, %v338_v12  ;;  %v372_v53 = vmul.f32 %v941_v35, %v699_v31 }
  0xaf   :  { %v215_v62 = vadd.f32 %v212_v25, %v181_v7  ;;  %v276_v51 = vsub.f32 %v269_v46, %v275_v36  ;;  %v309_v57 = vmul.f32 2.0, %v308_v23  ;;  %v373_v2 = vmul.f32 %v645_v56, %v729_v0 }
  0xb0   :  { %vm245_vm0 = vcmp.gt.f32.partialorder %v242_v58, 0.0  ;;  %v342_v54 = vadd.f32 %v341_v37, %v340_v17  ;;  %v375_v3 = vmul.f32 %v679_v4, %v778_v14  ;;  %v350_v26 = vadd.f32 %v852_v20, %v316_v10 }
  0xb1   :  { %v246_v52 = vsel %vm245_vm0, %v242_v58, 0.0  ;;  %vm279_vm1 = vcmp.gt.f32.partialorder %v276_v51, 0.0  ;;  %v310_v18 = vsub.f32 %v303_v15, %v309_v57  ;;  %v374_v60 = vadd.f32 %v373_v2, %v372_v53 }
  0xb2   :  { %v249_v59 = vadd.f32 %v246_v52, %v215_v62  ;;  %v343_v38 = vmul.f32 2.0, %v342_v54  ;;  %v280_v6 = vsel %vm279_vm1, %v276_v51, 0.0  ;;  %v371_v24 = vadd.f32 %v715_v43, %v823_v49 }
  0xb3   :  { %vm313_vm2 = vcmp.gt.f32.partialorder %v310_v18, 0.0  ;;  %v376_v21 = vadd.f32 %v375_v3, %v374_v60  ;;  %v384_v27 = vadd.f32 %v867_v29, %v350_v26  ;;  %vm415_vm7 = vcmp.eq.s32.totalorder %v701_v42, 0 }
  0xb4   :  { %v283_v9 = vadd.f32 %v280_v6, %v249_v59  ;;  %v344_v31 = vsub.f32 %v337_v13, %v343_v38  ;;  %v314_v56 = vsel %vm313_vm2, %v310_v18, 0.0 }
  0xb5   :  { %v377_v4 = vmul.f32 2.0, %v376_v21  ;;  %v386_v10 = vmul.f32 0.11111111, %v384_v27 }
  0xb6   :  { %v317_v0 = vadd.f32 %v314_v56, %v283_v9  ;;  %vm347_vm3 = vcmp.gt.f32.partialorder %v344_v31, 0.0 }
  0xb7   :  { %v348_v14 = vsel %vm347_vm3, %v344_v31, 0.0  ;;  %v378_v5 = vsub.f32 %v371_v24, %v377_v4 }
  0xb8   :  { %v351_v11 = vadd.f32 %v348_v14, %v317_v0 }
  0xb9   :  { %vm381_vm4 = vcmp.gt.f32.partialorder %v378_v5, 0.0 }
  0xba   :  { %v382_v44 = vsel %vm381_vm4, %v378_v5, 0.0 }
  0xbb   :  { %v385_v20 = vadd.f32 %v382_v44, %v351_v11 }
  0xbd   :  { %v387_v41 = vmul.f32 0.11111111, %v385_v20 }
  0xbf   :  { %v398_v19 = vsub.f32 %v386_v10, %v387_v41 }
  0xc1   :  { %v399_v61 = vadd.f32 1.0, %v398_v19 }
  0xc3   :  { %v400_v43 = vsel %vm863_vm13, %v399_v61, -1e+30 }
  0xc4   :  { %401 = vmax.xlane.f32.xlu0 %v400_v43 }
 0x136   :  { %v390_v49 = vpop.xlane.xlu1 %389 }
 0x137   :  { %v391_v1 = vrot.slane %v390_v49, 4 }
 0x139   :  { %v392_v16 = vadd.f32 %v391_v1, %v390_v49 }
 0x13b   :  { %v393_v32 = vrot.slane %v392_v16, 2 }
 0x13d   :  { %v394_v46 = vadd.f32 %v393_v32, %v392_v16 }
 0x13f   :  { %v395_v40 = vrot.slane %v394_v46, 1 }
 0x141   :  { %v396_v29 = vadd.f32 %v395_v40, %v394_v46 }
 0x143   :  { %456 = vpush %v396_v29 }
 0x151   :  { %v402_v48 = vpop.xlane.xlu0 %401 }
 0x152   :  { %v403_v45 = vmax.f32 %v402_v48, 0.0 }
 0x154   :  { %v405_v63 = vsel %vm404_vm5, %v403_v45, 0.0 }
 0x155   :  { %406 = vadd.xlane.f32.xlu0 %v405_v63 }
 0x174   :  { %s457_s0 = spop %456 }
 0x175   :  { %v417_v55 = vstv %s457_s0 }
 0x176   :  { %v418_v7 = vsel %vm416_vm6, %v417_v55, 0.0 }
 0x1e2   :  { %v407_v34 = vpop.xlane.xlu0 %406 }
 0x1e3   :  { %v408_v15 = vrot.slane %v407_v34, 4 }
 0x1e5   :  { %v409_v8 = vadd.f32 %v408_v15, %v407_v34 }
 0x1e7   :  { %v410_v30 = vrot.slane %v409_v8, 2 }
 0x1e9   :  { %v411_v39 = vadd.f32 %v410_v30, %v409_v8 }
 0x1eb   :  { %v412_v50 = vrot.slane %v411_v39, 1 }
 0x1ed   :  { %v413_v22 = vadd.f32 %v412_v50, %v411_v39 }
 0x1ef   :  { %458 = vpush %v413_v22 }
 0x220   :  { %s459_s20 = spop %458 }
 0x221   :  { %v419_v28 = vstv %s459_s20 }
 0x222   :  { %v420_v47 = vsel %vm415_vm7, %v419_v28, %v418_v7 }
 0x223   :  { %421 = vst [vmem:[%s925_s3] sm:$0xff] %v420_v47 }

</bundles_post_ra>
